<compile_context>
chip_gen: v7x
topology: tpu7x:2x2x1
jax: 0.10.0
libtpu: 0.0.40
codegen_flags: <defaults>
</compile_context>

<pallas_src>
import jax
import jax.numpy as jnp
from jax.experimental import pallas as pl
from jax.experimental.pallas import tpu as pltpu


def _round_up(n, m):
    return ((n + m - 1) // m) * m


# ----------------------------------------------------------------------------
# Fused kernel: (conv-as-matmul + bias + ReLU) -> pooled-sum accum -> FC + bias
# Grid: (B, HW // TILE_HW); axis 0 "parallel", axis 1 "arbitrary" (reduction).
#   p_ref     : (TILE_HW, K_PAD)       bf16  im2col patch tile (batch squeezed)
#   wconv_ref : (K_PAD, C_OUT_PAD)     bf16  conv weight, pre-transposed
#   bconv_ref : (1, C_OUT_PAD)         f32
#   wfc_ref   : (C_OUT_PAD, NCLS_PAD)  f32   FC weight, pre-transposed, 1/HW folded
#   bfc_ref   : (1, NCLS_PAD)          f32
#   o_ref     : (1, NCLS_PAD)          f32   per-batch logits row
#   acc_ref   : (1, C_OUT_PAD)         f32   VMEM scratch: pooled channel sum
# ----------------------------------------------------------------------------
def fused_conv_pool_fc_kernel(p_ref, wconv_ref, bconv_ref, wfc_ref, bfc_ref,
                              o_ref, acc_ref):
    k = pl.program_id(1)

    @pl.when(k == 0)
    def _():
        acc_ref[...] = jnp.zeros_like(acc_ref)

    # conv as matmul on the MXU (bf16 operands, f32 accumulation)
    feat = jnp.dot(p_ref[...], wconv_ref[...],
                   preferred_element_type=jnp.float32)        # (TILE_HW, C_OUT_PAD)
    feat = jnp.maximum(feat + bconv_ref[...], 0.0)            # bias + ReLU in f32

    # accumulate per-batch channel sums (global-avg-pool numerator)
    acc_ref[...] += jnp.sum(feat, axis=0, keepdims=True)

    @pl.when(k == pl.num_programs(1) - 1)
    def _():
        logits = jnp.dot(acc_ref[...], wfc_ref[...],
                         preferred_element_type=jnp.float32)  # (1, NCLS_PAD)
        o_ref[...] = logits + bfc_ref[...]


# ----------------------------------------------------------------------------
# Wrapper glue: layout conversion, im2col, weight pre-transpose/pad, pallas_call
# ----------------------------------------------------------------------------
def im2col_3x3(x_nhwc):
    """x_nhwc: (B, H, W, C) -> patches (B, H*W, 9*C); SAME padding, stride 1.

    Tap ordering is (kh, kw, c_in), matching the (C_out, 3, 3, C_in) weight
    reshape used below.
    """
    B, H, W, C = x_nhwc.shape
    xp = jnp.pad(x_nhwc, ((0, 0), (1, 1), (1, 1), (0, 0)))
    cols = []
    for dh in range(3):
        for dw in range(3):
            cols.append(xp[:, dh:dh + H, dw:dw + W, :])       # (B, H, W, C)
    patches = jnp.stack(cols, axis=3)                         # (B, H, W, 9, C)
    return patches.reshape(B, H * W, 9 * C)


def rn_classifier_forward(x_nchw, params):
    """x_nchw: (B, C_in, H, W) float32 (PyTorch layout at the interface)."""
    B, C_in, H, W = x_nchw.shape
    HW = H * W
    C_out = params["w_conv"].shape[0]
    n_cls = params["w_fc"].shape[0]

    K = 9 * C_in
    K_PAD = _round_up(K, 128)
    C_OUT_PAD = _round_up(C_out, 128)
    NCLS_PAD = _round_up(n_cls, 128)

    # Tile the HW (pooling/reduction) axis; small toy fits in one tile.
    TILE_HW = HW if HW <= 512 else 512
    assert HW % TILE_HW == 0
    assert TILE_HW == HW or TILE_HW % 8 == 0

    # --- patches: NCHW -> NHWC -> im2col -> pad K -> bf16 -------------------
    x_nhwc = jnp.transpose(x_nchw, (0, 2, 3, 1))
    patches = im2col_3x3(x_nhwc)                              # (B, HW, K) f32
    patches = jnp.pad(patches, ((0, 0), (0, 0), (0, K_PAD - K)))
    patches = patches.astype(jnp.bfloat16)
    # TODO(synk): for large inputs on v5e, form the 3x3 patches in-kernel from a
    # haloed NHWC slab (avoids this wrapper-side im2col's ~9x HBM read amp).

    # --- conv weight: (C_out, C_in, 3, 3) -> (K, C_out) pre-transposed, bf16 -
    w_conv = jnp.transpose(params["w_conv"], (0, 2, 3, 1)).reshape(C_out, K)
    w_conv = jnp.pad(w_conv.T, ((0, K_PAD - K), (0, C_OUT_PAD - C_out)))
    w_conv = w_conv.astype(jnp.bfloat16)

    b_conv = jnp.pad(params["b_conv"].reshape(1, C_out),
                     ((0, 0), (0, C_OUT_PAD - C_out))).astype(jnp.float32)

    # --- FC weight: fold 1/HW, pre-transpose to (C_out, n_cls), pad ---------
    w_fc = (params["w_fc"] / float(HW)).T                     # (C_out, n_cls)
    w_fc = jnp.pad(w_fc, ((0, C_OUT_PAD - C_out),
                          (0, NCLS_PAD - n_cls))).astype(jnp.float32)
    b_fc = jnp.pad(params["b_fc"].reshape(1, n_cls),
                   ((0, 0), (0, NCLS_PAD - n_cls))).astype(jnp.float32)

    grid = (B, HW // TILE_HW)

    out = pl.pallas_call(
        fused_conv_pool_fc_kernel,
        out_shape=jax.ShapeDtypeStruct((B, 1, NCLS_PAD), jnp.float32),
        grid_spec=pltpu.PrefetchScalarGridSpec(
            num_scalar_prefetch=0,
            grid=grid,
            in_specs=[
                pl.BlockSpec((None, TILE_HW, K_PAD), lambda b, k: (b, k, 0)),
                pl.BlockSpec((K_PAD, C_OUT_PAD), lambda b, k: (0, 0)),
                pl.BlockSpec((1, C_OUT_PAD), lambda b, k: (0, 0)),
                pl.BlockSpec((C_OUT_PAD, NCLS_PAD), lambda b, k: (0, 0)),
                pl.BlockSpec((1, NCLS_PAD), lambda b, k: (0, 0)),
            ],
            out_specs=pl.BlockSpec((None, 1, NCLS_PAD), lambda b, k: (b, 0, 0)),
            scratch_shapes=[pltpu.VMEM((1, C_OUT_PAD), jnp.float32)],
        ),
        compiler_params=pltpu.CompilerParams(
            dimension_semantics=("parallel", "arbitrary")),
    )(patches, w_conv, b_conv, w_fc, b_fc)

    return out.reshape(B, NCLS_PAD)[:, :n_cls]


# ----------------------------------------------------------------------------
# Parameter init + references
# ----------------------------------------------------------------------------
def init_params(key, c_in=4, c_out=32, n_cls=8):
    k1, k2, k3, k4 = jax.random.split(key, 4)
    w_conv = jax.random.normal(k1, (c_out, c_in, 3, 3), jnp.float32) * (
        1.0 / jnp.sqrt(c_in * 9.0))
    b_conv = jax.random.normal(k2, (1, c_out), jnp.float32) * 0.01
    w_fc = jax.random.normal(k3, (n_cls, c_out), jnp.float32) * (
        1.0 / jnp.sqrt(float(c_out)))
    b_fc = jax.random.normal(k4, (1, n_cls), jnp.float32) * 0.01
    return {"w_conv": w_conv, "b_conv": b_conv, "w_fc": w_fc, "b_fc": b_fc}


def reference_forward(x_nchw, params):
    """Pure-JAX f32 reference of the original module semantics."""
    out = jax.lax.conv_general_dilated(
        x_nchw, params["w_conv"], window_strides=(1, 1), padding="SAME",
        dimension_numbers=("NCHW", "OIHW", "NCHW"))
    out = jnp.maximum(out + params["b_conv"].reshape(1, -1, 1, 1), 0.0)
    pooled = jnp.mean(out, axis=(2, 3))                       # (B, C_out)
    return pooled @ params["w_fc"].T + params["b_fc"]


def reference_forward_bf16(x_nchw, params):
    """Same forward, with conv matmul operands quantized to bf16 exactly like
    the kernel (f32 accumulate) -- for a tight-tolerance logic check."""
    x_nhwc = jnp.transpose(x_nchw, (0, 2, 3, 1))
    patches = im2col_3x3(x_nhwc)                              # (B, HW, K)
    C_out = params["w_conv"].shape[0]
    w = jnp.transpose(params["w_conv"], (0, 2, 3, 1)).reshape(C_out, -1)
    feat = jnp.einsum("bmk,ck->bmc",
                      patches.astype(jnp.bfloat16), w.astype(jnp.bfloat16),
                      preferred_element_type=jnp.float32)
    feat = jnp.maximum(feat + params["b_conv"].reshape(1, 1, -1), 0.0)
    pooled = jnp.mean(feat, axis=1)                           # (B, C_out)
    return pooled @ params["w_fc"].T + params["b_fc"]


if __name__ == "__main__":
    key = jax.random.PRNGKey(0)
    kx, kp = jax.random.split(key)

    B, C_in, H, W = 2, 4, 16, 16
    x = jax.random.normal(kx, (B, C_in, H, W), jnp.float32)   # NCHW input
    params = init_params(kp, c_in=C_in, c_out=32, n_cls=8)

    logits = jax.jit(rn_classifier_forward)(x, params)
    logits = jax.block_until_ready(logits)
    assert logits.shape == (B, 8)

    # Tight check: kernel logic vs a reference with identical bf16 operand cast.
    ref_bf16 = reference_forward_bf16(x, params)
    assert jnp.allclose(logits, ref_bf16, atol=2e-3, rtol=2e-3), \
        "mismatch vs bf16-matched reference"

    # Loose check: original-module (f32) semantics preserved up to bf16 quant.
    ref_f32 = reference_forward(x, params)
    assert jnp.allclose(logits, ref_f32, atol=5e-2, rtol=5e-2), \
        "mismatch vs f32 reference"

    print("KERNEL_OK")
</pallas_src>

<mosaic_0001>
module attributes {stable_mosaic.version = 11 : i64} {
  func.func @fused_conv_pool_fc_kernel(%arg0: i32, %arg1: i32, %arg2: memref<1x256x128xbf16, #tpu.memory_space<vmem>>, %arg3: memref<128x128xbf16, #tpu.memory_space<vmem>>, %arg4: memref<1x128xf32, #tpu.memory_space<vmem>>, %arg5: memref<128x128xf32, #tpu.memory_space<vmem>>, %arg6: memref<1x128xf32, #tpu.memory_space<vmem>>, %arg7: memref<1x1x128xf32, #tpu.memory_space<vmem>>, %arg8: memref<1x128xf32, #tpu.memory_space<vmem>>) attributes {dimension_semantics = [#tpu.dimension_semantics<parallel>, #tpu.dimension_semantics<arbitrary>], iteration_bounds = array<i64: 2, 1>, scalar_prefetch = 0 : i64, scratch_operands = 1 : i64, tpu.core_type = #tpu.core_type<tc>, window_params = [{transform_indices = @transform_0, window_bounds = array<i64: 1, 256, 128>}, {pipeline_mode = #tpu.pipeline_mode<synchronous>, transform_indices = @transform_1, window_bounds = array<i64: 128, 128>}, {pipeline_mode = #tpu.pipeline_mode<synchronous>, transform_indices = @transform_2, window_bounds = array<i64: 1, 128>}, {pipeline_mode = #tpu.pipeline_mode<synchronous>, transform_indices = @transform_3, window_bounds = array<i64: 128, 128>}, {pipeline_mode = #tpu.pipeline_mode<synchronous>, transform_indices = @transform_4, window_bounds = array<i64: 1, 128>}, {transform_indices = @transform_5, window_bounds = array<i64: 1, 1, 128>}]} {
    %c0_i32 = arith.constant 0 : i32
    %0 = arith.cmpi eq, %arg1, %c0_i32 : i32
    %1 = arith.extui %0 : i1 to i32
    %c0_i32_0 = arith.constant 0 : i32
    %2 = arith.cmpi ne, %1, %c0_i32_0 : i32
    scf.if %2 {
      %cst_15 = arith.constant 0.000000e+00 : f32
      %20 = vector.broadcast %cst_15 : f32 to vector<1x128xf32>
      %c0_16 = arith.constant 0 : index
      %c0_17 = arith.constant 0 : index
      %21 = vector.load %arg8[%c0_16, %c0_17] : memref<1x128xf32, #tpu.memory_space<vmem>>, vector<1x128xf32>
      tpu.vector_store %arg8[%c0_16, %c0_17], %20 {strides = array<i32>} : memref<1x128xf32, #tpu.memory_space<vmem>>, vector<1x128xf32>,
    } else {
    }
    %c0 = arith.constant 0 : index
    %c0_1 = arith.constant 0 : index
    %c0_2 = arith.constant 0 : index
    %3 = vector.load %arg2[%c0, %c0_1, %c0_2] : memref<1x256x128xbf16, #tpu.memory_space<vmem>>, vector<1x256x128xbf16>
    %4 = vector.shape_cast %3 : vector<1x256x128xbf16> to vector<256x128xbf16>
    %c0_3 = arith.constant 0 : index
    %c0_4 = arith.constant 0 : index
    %5 = vector.load %arg3[%c0_3, %c0_4] : memref<128x128xbf16, #tpu.memory_space<vmem>>, vector<128x128xbf16>
    %cst = arith.constant dense<0.000000e+00> : vector<256x128xf32>
    %6 = tpu.matmul %4, %5, %cst {dimension_numbers = #tpu.dot_dimension_numbers<[1], [0], [0], [1], [0, 0, 1, 1], [], []>} : vector<256x128xbf16>, vector<128x128xbf16>, vector<256x128xf32> -> vector<256x128xf32>
    %c0_5 = arith.constant 0 : index
    %c0_6 = arith.constant 0 : index
    %7 = vector.load %arg4[%c0_5, %c0_6] : memref<1x128xf32, #tpu.memory_space<vmem>>, vector<1x128xf32>
    %8 = vector.broadcast %7 : vector<1x128xf32> to vector<256x128xf32>
    %9 = arith.addf %6, %8 : vector<256x128xf32>
    %cst_7 = arith.constant 0.000000e+00 : f32
    %10 = vector.broadcast %cst_7 : f32 to vector<256x128xf32>
    %11 = arith.maximumf %9, %10 : vector<256x128xf32>
    %c0_8 = arith.constant 0 : index
    %c0_9 = arith.constant 0 : index
    %12 = vector.load %arg8[%c0_8, %c0_9] : memref<1x128xf32, #tpu.memory_space<vmem>>, vector<1x128xf32>
    %cst_10 = arith.constant dense<0.000000e+00> : vector<128xf32>
    %13 = vector.multi_reduction <add>, %11, %cst_10 [0] : vector<256x128xf32> to vector<128xf32>
    %14 = vector.shape_cast %13 : vector<128xf32> to vector<1x128xf32>
    %15 = arith.addf %12, %14 : vector<1x128xf32>
    %c0_11 = arith.constant 0 : index
    %c0_12 = arith.constant 0 : index
    %16 = vector.load %arg8[%c0_11, %c0_12] : memref<1x128xf32, #tpu.memory_space<vmem>>, vector<1x128xf32>
    tpu.vector_store %arg8[%c0_11, %c0_12], %15 {strides = array<i32>} : memref<1x128xf32, #tpu.memory_space<vmem>>, vector<1x128xf32>,
    %c0_i32_13 = arith.constant 0 : i32
    %17 = arith.cmpi eq, %arg1, %c0_i32_13 : i32
    %18 = arith.extui %17 : i1 to i32
    %c0_i32_14 = arith.constant 0 : i32
    %19 = arith.cmpi ne, %18, %c0_i32_14 : i32
    scf.if %19 {
      %c0_15 = arith.constant 0 : index
      %c0_16 = arith.constant 0 : index
      %20 = vector.load %arg8[%c0_15, %c0_16] : memref<1x128xf32, #tpu.memory_space<vmem>>, vector<1x128xf32>
      %c0_17 = arith.constant 0 : index
      %c0_18 = arith.constant 0 : index
      %21 = vector.load %arg5[%c0_17, %c0_18] : memref<128x128xf32, #tpu.memory_space<vmem>>, vector<128x128xf32>
      %cst_19 = arith.constant dense<0.000000e+00> : vector<1x128xf32>
      %22 = tpu.matmul %20, %21, %cst_19 {dimension_numbers = #tpu.dot_dimension_numbers<[1], [0], [0], [1], [0, 0, 1, 1], [], []>} : vector<1x128xf32>, vector<128x128xf32>, vector<1x128xf32> -> vector<1x128xf32>
      %c0_20 = arith.constant 0 : index
      %c0_21 = arith.constant 0 : index
      %23 = vector.load %arg6[%c0_20, %c0_21] : memref<1x128xf32, #tpu.memory_space<vmem>>, vector<1x128xf32>
      %24 = arith.addf %22, %23 : vector<1x128xf32>
      %c0_22 = arith.constant 0 : index
      %c0_23 = arith.constant 0 : index
      %c0_24 = arith.constant 0 : index
      %25 = vector.load %arg7[%c0_22, %c0_23, %c0_24] : memref<1x1x128xf32, #tpu.memory_space<vmem>>, vector<1x1x128xf32>
      %26 = vector.shape_cast %25 : vector<1x1x128xf32> to vector<1x128xf32>
      %27 = vector.shape_cast %24 : vector<1x128xf32> to vector<1x1x128xf32>
      tpu.vector_store %arg7[%c0_22, %c0_23, %c0_24], %27 {strides = array<i32>} : memref<1x1x128xf32, #tpu.memory_space<vmem>>, vector<1x1x128xf32>,
    } else {
    }
    return
  }
  func.func @transform_0(%arg0: i32, %arg1: i32) -> (i32, i32, i32) {
    %c0_i32 = arith.constant 0 : i32
    %c0_i32_0 = arith.constant 0 : i32
    return %arg0, %arg1, %c0_i32 : i32, i32, i32
  }
  func.func @transform_1(%arg0: i32, %arg1: i32) -> (i32, i32) {
    %c0_i32 = arith.constant 0 : i32
    %c0_i32_0 = arith.constant 0 : i32
    %c0_i32_1 = arith.constant 0 : i32
    return %c0_i32, %c0_i32_0 : i32, i32
  }
  func.func @transform_2(%arg0: i32, %arg1: i32) -> (i32, i32) {
    %c0_i32 = arith.constant 0 : i32
    %c0_i32_0 = arith.constant 0 : i32
    %c0_i32_1 = arith.constant 0 : i32
    return %c0_i32, %c0_i32_0 : i32, i32
  }
  func.func @transform_3(%arg0: i32, %arg1: i32) -> (i32, i32) {
    %c0_i32 = arith.constant 0 : i32
    %c0_i32_0 = arith.constant 0 : i32
    %c0_i32_1 = arith.constant 0 : i32
    return %c0_i32, %c0_i32_0 : i32, i32
  }
  func.func @transform_4(%arg0: i32, %arg1: i32) -> (i32, i32) {
    %c0_i32 = arith.constant 0 : i32
    %c0_i32_0 = arith.constant 0 : i32
    %c0_i32_1 = arith.constant 0 : i32
    return %c0_i32, %c0_i32_0 : i32, i32
  }
  func.func @transform_5(%arg0: i32, %arg1: i32) -> (i32, i32, i32) {
    %c0_i32 = arith.constant 0 : i32
    %c0_i32_0 = arith.constant 0 : i32
    %c0_i32_1 = arith.constant 0 : i32
    return %arg0, %c0_i32, %c0_i32_0 : i32, i32, i32
  }
}

</mosaic_0001>

<bundles_post_ra>
// kernel: rn_classifier_forward.1
= control target key start
LH: loop header
LB: loop body
LE: loop exit
PB: predicated region body
PF: predicated region fallthrough
CT: control target
= control target key end

     0   :  { %10 = vsyncpa [#allocation4], 0  ;;  %s1530_s0 = inlined_call_operand.vmem [shape: bf16[2,256,128], index: 0, kind: input, shape index: {}]   ;;  %s1531_s1 = inlined_call_operand.vmem [shape: bf16[128,128], index: 1, kind: input, shape index: {}]   ;;  %s1532_s2 = inlined_call_operand.vmem [shape: f32[1,128], index: 2, kind: input, shape index: {}]   ;;  %s1533_s3 = inlined_call_operand.vmem [shape: f32[128,128], index: 3, kind: input, shape index: {}]   ;;  %s1534_s4 = inlined_call_operand.vmem [shape: f32[1,128], index: 4, kind: input, shape index: {}]   ;;  %s1535_s5 = inlined_call_operand.hbm [shape: f32[2,1,128], index: 5, kind: output, shape index: {}]  }
   0x1   :  { %12 = vsyncpa [#allocation4 + $0x1], 0  ;;  %s1258_s18 = smov 0   ;;  %s1260_s19 = smov 0  }
   0x2   :  { %s1262_s20 = smov 0   ;;  %s1264_s21 = smov 0  }
   0x3   :  { %s1266_s22 = smov 0   ;;  %s1268_s23 = smov 0  }
   0x4 LB: > { %s862_s24 = sadd.s32 4294967295, %s1222_s23   ;;  %s863_s25 = sadd.s32 4294967294, %s1222_s23   ;;  %s1222_s23 = sphi %s1268_s23, %s18_s23   ;;  %s1218_s22 = sphi %s1266_s22, %s1542_s22   ;;  %s1214_s21 = sphi %s1264_s21, %s1541_s21   ;;  %s1210_s20 = sphi %s1262_s20, %s1540_s20   ;;  %s1206_s19 = sphi %s1260_s19, %s1539_s19   ;;  %s1202_s18 = sphi %s1258_s18, %s1538_s18  }
   0x5   : > { %s30_s26 = sadd.s32 1, %s1218_s22  ;;  %s149_s27 = sadd.s32 1, %s1210_s20 }
   0x6   : > { %p32_p0 = scmp.ge.s32.totalorder %s30_s26, 2  ;;  %p159_p1 = scmp.ne.s32.totalorder %s1210_s20, %s1206_s19 }
   0x7   : > { %p160_p2 = scmp.eq.s32.totalorder %s862_s24, 1  ;;  %p165_p3 = scmp.ne.s32.totalorder %s1206_s19, %s1202_s18 }
   0x8   : > { %s1544_s26 = smov (%p32_p0, %s30_s26), 0  ;;  %p166_p5 = scmp.eq.s32.totalorder %s863_s25, 1 }
   0x9   : > { %p1298_p4 = por %p160_p2, %p159_p1  ;;  %s146_s29 = ssub.s32 %s1218_s22, %s1544_s26 }
   0xa   : > { %p866_p6 = scmp.ge.s32.totalorder %s1222_s23, 1  ;;  %p147_p7 = scmp.eq.s32.totalorder %s146_s29, 0 }
   0xb   : > { %p1305_p8 = por %p166_p5, %p165_p3  ;;  %p209_p9 = scmp.lt.s32.totalorder %s1222_s23, 3 }
   0xc   : > { %s1311_s6 = scalar_select %p147_p7, %s1210_s20, %s149_s27  }
   0xd   : > { %p210_p10 = pnand %p866_p6, %p209_p9 }
   0xe   : > { %v1120_v0 = vld [vmem:[%s1531_s1] sm:$0xff] (!%p210_p10)   ;;  %p241_p11 = scmp.lt.s32.totalorder (!%p210_p10), %s1214_s21, 1  ;;  %v1121_v1 = vld [vmem:[%s1531_s1 + $0x8] sm:$0xff] (!%p210_p10)   ;;  %v1122_v2 = vld [vmem:[%s1531_s1 + $0x10] sm:$0xff] (!%p210_p10)   ;;  %v1224_v27 = vmov (!%p210_p10), 0.0|0.0   ;;  %v1225_v39 = vmov (!%p210_p10), 0.0  }
   0xf   : > { %213 = sbr.rel (%p210_p10) target bundleno = 578 (0x242), region = 40  ;;  %939 = vmatprep.subr.bf16.mxu0 (!%p210_p10), %v1120_v0  ;;  %1046 = vmatprep.subr.bf16.mxu1 (!%p210_p10), %v1120_v0  ;;  %v1123_v3 = vld [vmem:[%s1531_s1 + $0x18] sm:$0xff] (!%p210_p10)   ;;  %v1124_v5 = vld [vmem:[%s1531_s1 + $0x20] sm:$0xff] (!%p210_p10)   ;;  %v1125_v6 = vld [vmem:[%s1531_s1 + $0x28] sm:$0xff] (!%p210_p10)   ;;  %255 = vst [vmem:[#allocation2] sm:$0x1] (!%p210_p10), %v1225_v39 }
  0x10   : > { %940 = vmatpush3.bf16.msra.mxu0 (!%p210_p10), %v1120_v0  ;;  %1054 = vmatpush3.bf16.msra.mxu1 (!%p210_p10), %v1120_v0  ;;  %v1126_v8 = vld [vmem:[%s1531_s1 + $0x30] sm:$0xff] (!%p210_p10)   ;;  %v1127_v9 = vld [vmem:[%s1531_s1 + $0x38] sm:$0xff] (!%p210_p10)   ;;  %v692_v24 = vld [vmem:[%s1533_s3] sm:$0xff] (!%p210_p10)  ;;  %vm1226_vm0 = vmmov (!%p210_p10), 0   ;;  %s238_s24 = sand.u32 (!%p210_p10), 1, %s1206_s19   ;;  %s894_s27 = sshll.u32 (!%p210_p10), %s1214_s21, 4 }
  0x11   : > { %941 = vmatprep.subr.bf16.mxu0 (!%p210_p10), %v1121_v1  ;;  %1047 = vmatprep.subr.bf16.mxu1 (!%p210_p10), %v1121_v1  ;;  %v693_v25 = vld [vmem:[%s1533_s3 + $0x8] sm:$0xff] (!%p210_p10)  ;;  %v694_v28 = vld [vmem:[%s1533_s3 + $0x10] sm:$0xff] (!%p210_p10)  ;;  %v695_v29 = vld [vmem:[%s1533_s3 + $0x18] sm:$0xff] (!%p210_p10)  ;;  %s239_s29 = scalar_lea.vmem (!%p210_p10), [#allocation3], %s238_s24  ;;  %s1483_s10 = scalar_lea.hbm (!%p210_p10), %s1535_s5, %s894_s27 }
  0x12   : > { %v1023_v26 = vpack.c.bf16 (!%p210_p10), %v693_v25, %v692_v24  ;;  %v1026_v30 = vpack.c.bf16 (!%p210_p10), %v695_v29, %v694_v28  ;;  %v696_v31 = vld [vmem:[%s1533_s3 + $0x20] sm:$0xff] (!%p210_p10)  ;;  %v697_v32 = vld [vmem:[%s1533_s3 + $0x28] sm:$0xff] (!%p210_p10)  ;;  %v698_v34 = vld [vmem:[%s1533_s3 + $0x30] sm:$0xff] (!%p210_p10)  ;;  %s793_s7 = sshll.u32 (!%p210_p10), %s239_s29, 4  ;;  %s1485_s7 = int_to_ptr.vmem [resolvable:$true] %s793_s7 }
  0x13   : > { %v1029_v33 = vpack.c.bf16 (!%p210_p10), %v697_v32, %v696_v31  ;;  %v699_v35 = vld [vmem:[%s1533_s3 + $0x38] sm:$0xff] (!%p210_p10)  ;;  %v700_v37 = vld [vmem:[%s1533_s3 + $0x40] sm:$0xff] (!%p210_p10)  ;;  %v701_v38 = vld [vmem:[%s1533_s3 + $0x48] sm:$0xff] (!%p210_p10)  ;;  %s1144_s12 = scalar_lea.vmem (!%p210_p10), %s1485_s7, 16 }
  0x14   : > { %942 = vmatpush3.bf16.msra.mxu0 (!%p210_p10), %v1121_v1  ;;  %1055 = vmatpush3.bf16.msra.mxu1 (!%p210_p10), %v1121_v1  ;;  %v1032_v36 = vpack.c.bf16 (!%p210_p10), %v699_v35, %v698_v34  ;;  %v1035_v40 = vpack.c.bf16 (!%p210_p10), %v701_v38, %v700_v37  ;;  %v702_v41 = vld [vmem:[%s1533_s3 + $0x50] sm:$0xff] (!%p210_p10)  ;;  %v703_v42 = vld [vmem:[%s1533_s3 + $0x58] sm:$0xff] (!%p210_p10)  ;;  %v704_v43 = vld [vmem:[%s1533_s3 + $0x60] sm:$0xff] (!%p210_p10)  ;;  %p1145_p12 = scmp.ne.s32.totalorder (!%p210_p10), %s1485_s7, %s1144_s12 }
  0x15   : > { %943 = vmatprep.subr.bf16.mxu0 (!%p210_p10), %v1122_v2  ;;  %1048 = vmatprep.subr.bf16.mxu1 (!%p210_p10), %v1122_v2  ;;  %v1038_v44 = vpack.c.bf16 (!%p210_p10), %v703_v42, %v702_v41  ;;  %v705_v45 = vld [vmem:[%s1533_s3 + $0x68] sm:$0xff] (!%p210_p10)  ;;  %v706_v47 = vld [vmem:[%s1533_s3 + $0x70] sm:$0xff] (!%p210_p10)  ;;  %v707_v48 = vld [vmem:[%s1533_s3 + $0x78] sm:$0xff] (!%p210_p10) }
  0x16   : > { %s242_s11 = scalar_select %p241_p11, %s1214_s21, 1  ;;  %v1041_v46 = vpack.c.bf16 %v705_v45, %v704_v43  ;;  %v1044_v49 = vpack.c.bf16 %v707_v48, %v706_v47  ;;  %v1411_v50 = vld [vmem:[%s1532_s2] ss:$0 sm:$0xff] }
  0x17   : > { %p1146_p13 = pnand %p1145_p12, %p1298_p4  ;;  %s1227_s21 = smov [#allocation3]  }
  0x18   : > { %s897_s14 = sshll.u32 %s242_s11, 7  ;;  %944 = vmatpush3.bf16.msra.mxu0 %v1122_v2  ;;  %1056 = vmatpush3.bf16.msra.mxu1 %v1122_v2  ;;  %s781_s11 = scalar_lea.sflag [#allocation4], %s238_s24 }
  0x19   : > { %s1327_s17 = scalar_lea.vmem %s1530_s0, %s897_s14  ;;  %945 = vmatprep.subr.bf16.mxu0 %v1123_v3  ;;  %1049 = vmatprep.subr.bf16.mxu1 %v1123_v3  ;;  %p1147_p0 = pneg %p1146_p13 }
  0x1a   : > { %v1128_v4 = vld [vmem:[%s1327_s17] sm:$0xff]   ;;  %v1129_v10 = vld [vmem:[%s1327_s17 + $0x8] sm:$0xff]   ;;  %v1130_v12 = vld [vmem:[%s1327_s17 + $0x10] sm:$0xff]   ;;  %s1148_s13 = sshll.u32 %s1227_s21, 4  ;;  %s1149_s13 = int_to_ptr.vmem [resolvable:$false] %s1148_s13 }
  0x1b   : > { %955 = vmatprep.mubr.bf16.mxu0 %v1128_v4  ;;  %v1136_v7 = vld [vmem:[%s1327_s17 + $0x40] sm:$0xff]   ;;  %v1137_v11 = vld [vmem:[%s1327_s17 + $0x48] sm:$0xff]   ;;  %v1138_v13 = vld [vmem:[%s1327_s17 + $0x50] sm:$0xff]   ;;  %s1150_s14 = scalar_lea.vmem %s1149_s13, 32  ;;  %p1151_p1 = scmp.lt.s32.totalorder %s1485_s7, %s1149_s13 }
  0x1c   : > { %946 = vmatpush3.bf16.msra.mxu0 %v1123_v3  ;;  %1057 = vmatpush3.bf16.msra.mxu1 %v1123_v3  ;;  %v1131_v14 = vld [vmem:[%s1327_s17 + $0x18] sm:$0xff]   ;;  %v1132_v16 = vld [vmem:[%s1327_s17 + $0x20] sm:$0xff]   ;;  %v1133_v18 = vld [vmem:[%s1327_s17 + $0x28] sm:$0xff]   ;;  %p1152_p2 = scmp.lt.s32.totalorder %s1150_s14, %s1144_s12 }
  0x1d   : > { %947 = vmatprep.subr.bf16.mxu0 %v1124_v5  ;;  %1050 = vmatprep.subr.bf16.mxu1 %v1124_v5  ;;  %v1139_v15 = vld [vmem:[%s1327_s17 + $0x58] sm:$0xff]   ;;  %v1140_v17 = vld [vmem:[%s1327_s17 + $0x60] sm:$0xff]   ;;  %v1141_v19 = vld [vmem:[%s1327_s17 + $0x68] sm:$0xff]  }
  0x1e   : > { %971 = vmatprep.mubr.bf16.mxu1 %v1136_v7  ;;  %v1134_v20 = vld [vmem:[%s1327_s17 + $0x30] sm:$0xff]   ;;  %v1135_v22 = vld [vmem:[%s1327_s17 + $0x38] sm:$0xff]   ;;  %p1153_p3 = por %p1152_p2, %p1151_p1 }
  0x1f   : > { %v1142_v21 = vld [vmem:[%s1327_s17 + $0x70] sm:$0xff]   ;;  %v1143_v23 = vld [vmem:[%s1327_s17 + $0x78] sm:$0xff]  }
  0x20   : > { %948 = vmatpush3.bf16.msra.mxu0 %v1124_v5  ;;  %1058 = vmatpush3.bf16.msra.mxu1 %v1124_v5  ;;  %p1154_p5 = pnand %p1153_p3, %p1147_p0 }
  0x21   : > { %949 = vmatprep.subr.bf16.mxu0 %v1125_v6  ;;  %1051 = vmatprep.subr.bf16.mxu1 %v1125_v6 }
  0x24   : > { %950 = vmatpush3.bf16.msra.mxu0 %v1125_v6  ;;  %1059 = vmatpush3.bf16.msra.mxu1 %v1125_v6 }
  0x25   : > { %951 = vmatprep.subr.bf16.mxu0 %v1126_v8  ;;  %1052 = vmatprep.subr.bf16.mxu1 %v1126_v8 }
  0x28   : > { %952 = vmatpush3.bf16.msra.mxu0 %v1126_v8  ;;  %1060 = vmatpush3.bf16.msra.mxu1 %v1126_v8 }
  0x29   : > { %953 = vmatprep.subr.bf16.mxu0 %v1127_v9  ;;  %1053 = vmatprep.subr.bf16.mxu1 %v1127_v9 }
  0x2c   : > { %954 = vmatpush3.bf16.msra.mxu0 %v1127_v9  ;;  %1061 = vmatpush3.bf16.msra.mxu1 %v1127_v9 }
  0x2d   : > { %1022 = vmatprep.subr.bf16.mxu1 %v1224_v27 }
  0x2f   : > { %956 = vmatmul.mubr.bf16.vlgmr.msra.gmra.mrb[0].mxu0 %v1129_v10  ;;  %972 = vmatmul.mubr.bf16.vlgmr.msra.gmra.mrb[0].mxu1 %v1137_v11 }
  0x30   : > { %959 = vmatprep.mubr.bf16.mxu0 %v1130_v12  ;;  %975 = vmatprep.mubr.bf16.mxu1 %v1138_v13 }
  0x31   : > { %1024 = vmatpush3.bf16.msra.mxu1 %v1023_v26 }
  0x32   : > { %1025 = vmatprep.subr.bf16.mxu1 %v1224_v27 }
  0x35   : > { %1027 = vmatpush3.bf16.msra.mxu1 %v1026_v30 }
  0x36   : > { %1028 = vmatprep.subr.bf16.mxu1 %v1224_v27 }
  0x37   : > { %960 = vmatmul.mubr.bf16.gmra.mrb[4].mxu0 %v1131_v14  ;;  %976 = vmatmul.mubr.bf16.gmra.mrb[4].mxu1 %v1139_v15 }
  0x38   : > { %963 = vmatprep.mubr.bf16.mxu0 %v1132_v16  ;;  %979 = vmatprep.mubr.bf16.mxu1 %v1140_v17 }
  0x39   : > { %1030 = vmatpush3.bf16.msra.mxu1 %v1029_v33 }
  0x3a   : > { %1031 = vmatprep.subr.bf16.mxu1 %v1224_v27 }
  0x3d   : > { %1033 = vmatpush3.bf16.msra.mxu1 %v1032_v36 }
  0x3e   : > { %1034 = vmatprep.subr.bf16.mxu1 %v1224_v27 }
  0x3f   : > { %964 = vmatmul.mubr.bf16.gmra.mrb[8].mxu0 %v1133_v18  ;;  %980 = vmatmul.mubr.bf16.gmra.mrb[8].mxu1 %v1141_v19 }
  0x40   : > { %967 = vmatprep.mubr.bf16.mxu0 %v1134_v20  ;;  %983 = vmatprep.mubr.bf16.mxu1 %v1142_v21 }
  0x41   : > { %1036 = vmatpush3.bf16.msra.mxu1 %v1035_v40 }
  0x42   : > { %1037 = vmatprep.subr.bf16.mxu1 %v1224_v27 }
  0x45   : > { %1039 = vmatpush3.bf16.msra.mxu1 %v1038_v44 }
  0x46   : > { %1040 = vmatprep.subr.bf16.mxu1 %v1224_v27 }
  0x47   : > { %968 = vmatmul.mubr.bf16.gmra.mrb[12].mxu0 %v1135_v22  ;;  %984 = vmatmul.mubr.bf16.gmra.mrb[12].mxu1 %v1143_v23 }
  0x48   : > { %1019 = vmatprep.mubr.msk.f32.mxu1 %vm1226_vm0, %v1225_v39 }
  0x49   : > { %1042 = vmatpush3.bf16.msra.mxu1 %v1041_v46 }
  0x4a   : > { %1043 = vmatprep.subr.bf16.mxu1 %v1224_v27 }
  0x4d   : > { %1045 = vmatpush3.bf16.msra.mxu1 %v1044_v49 }
 0x102   : > { %v957_v51 = vpop.f32.mrb[0].mxu0  ;;  %v1413_v52 = vpop.f32.mrb[0].mxu1 }
 0x103   : > { %v489_v53 = vpop.f32.mrb[1].mxu0  ;;  %v1415_v54 = vpop.f32.mrb[1].mxu1  ;;  %v498_v60 = vadd.f32 %v957_v51, %v1411_v50 }
 0x104   : > { %v490_v55 = vadd.f32 %v1411_v50, %v489_v53  ;;  %v958_v56 = vpop.f32.mrb[2].mxu0  ;;  %v1418_v57 = vpop.f32.mrb[2].mxu1 }
 0x105   : > { %v492_v58 = vpop.f32.mrb[3].mxu0  ;;  %v1420_v59 = vpop.f32.mrb[3].mxu1  ;;  %v501_v63 = vadd.f32 %v958_v56, %v1411_v50  ;;  %v618_v1 = vmax.f32 %v498_v60, 0.0 }
 0x106   : > { %v493_v61 = vadd.f32 %v1411_v50, %v492_v58  ;;  %v616_v62 = vmax.f32 %v490_v55, 0.0 }
 0x107   : > { %v619_v7 = vmax.f32 %v501_v63, 0.0 }
 0x108   : > { %v617_v0 = vmax.f32 %v493_v61, 0.0 }
 0x10a   : > { %v649_v2 = vadd.f32 %v617_v0, %v616_v62  ;;  %v961_v3 = vpop.f32.mrb[4].mxu0  ;;  %v1425_v4 = vpop.f32.mrb[4].mxu1 }
 0x10b   : > { %v505_v5 = vpop.f32.mrb[5].mxu0  ;;  %v1427_v6 = vpop.f32.mrb[5].mxu1  ;;  %v514_v14 = vadd.f32 %v961_v3, %v1411_v50 }
 0x10c   : > { %v650_v8 = vadd.f32 %v649_v2, %v618_v1  ;;  %v506_v9 = vadd.f32 %v1411_v50, %v505_v5  ;;  %v962_v10 = vpop.f32.mrb[6].mxu0  ;;  %v1430_v11 = vpop.f32.mrb[6].mxu1  ;;  %v554_v2 = vadd.f32 %v1411_v50, %v1415_v54  ;;  %v570_v54 = vadd.f32 %v1411_v50, %v1427_v6 }
 0x10d   : > { %v508_v12 = vpop.f32.mrb[7].mxu0  ;;  %v1432_v13 = vpop.f32.mrb[7].mxu1  ;;  %v517_v19 = vadd.f32 %v962_v10, %v1411_v50  ;;  %v622_v21 = vmax.f32 %v514_v14, 0.0  ;;  %v557_v10 = vadd.f32 %v1411_v50, %v1420_v59 }
 0x10e   : > { %v620_v15 = vmax.f32 %v506_v9, 0.0  ;;  %v651_v16 = vadd.f32 %v650_v8, %v619_v7  ;;  %v509_v17 = vadd.f32 %v1411_v50, %v508_v12  ;;  %v632_v9 = vmax.f32 %v554_v2, 0.0 }
 0x10f   : > { %v623_v27 = vmax.f32 %v517_v19, 0.0  ;;  %v562_v12 = vadd.f32 %v1413_v52, %v1411_v50  ;;  %v573_v59 = vadd.f32 %v1411_v50, %v1432_v13  ;;  %v578_v52 = vadd.f32 %v1425_v4, %v1411_v50 }
 0x110   : > { %v652_v18 = vadd.f32 %v651_v16, %v620_v15  ;;  %v621_v20 = vmax.f32 %v509_v17, 0.0  ;;  %v565_v16 = vadd.f32 %v1418_v57, %v1411_v50  ;;  %v633_v17 = vmax.f32 %v557_v10, 0.0 }
 0x111   : > { %v581_v57 = vadd.f32 %v1430_v11, %v1411_v50  ;;  %v638_v6 = vmax.f32 %v578_v52, 0.0 }
 0x112   : > { %v653_v22 = vadd.f32 %v652_v18, %v621_v20  ;;  %v965_v23 = vpop.f32.mrb[8].mxu0  ;;  %v1437_v24 = vpop.f32.mrb[8].mxu1  ;;  %v634_v18 = vmax.f32 %v562_v12, 0.0  ;;  %v635_v20 = vmax.f32 %v565_v16, 0.0 }
 0x113   : > { %v521_v25 = vpop.f32.mrb[9].mxu0  ;;  %v585_v26 = vpop.f32.mrb[9].mxu1  ;;  %v530_v34 = vadd.f32 %v965_v23, %v1411_v50  ;;  %v594_v13 = vadd.f32 %v1437_v24, %v1411_v50 }
 0x114   : > { %v654_v28 = vadd.f32 %v653_v22, %v622_v21  ;;  %v522_v29 = vadd.f32 %v1411_v50, %v521_v25  ;;  %v966_v30 = vpop.f32.mrb[10].mxu0  ;;  %v1440_v31 = vpop.f32.mrb[10].mxu1  ;;  %v636_v22 = vmax.f32 %v570_v54, 0.0 }
 0x115   : > { %v524_v32 = vpop.f32.mrb[11].mxu0  ;;  %v588_v33 = vpop.f32.mrb[11].mxu1  ;;  %v533_v39 = vadd.f32 %v966_v30, %v1411_v50  ;;  %v626_v41 = vmax.f32 %v530_v34, 0.0  ;;  %v639_v30 = vmax.f32 %v581_v57, 0.0 }
 0x116   : > { %v624_v35 = vmax.f32 %v522_v29, 0.0  ;;  %v655_v36 = vadd.f32 %v654_v28, %v623_v27  ;;  %v525_v37 = vadd.f32 %v1411_v50, %v524_v32  ;;  %v637_v27 = vmax.f32 %v573_v59, 0.0 }
 0x117   : > { %v627_v47 = vmax.f32 %v533_v39, 0.0  ;;  %v586_v28 = vadd.f32 %v1411_v50, %v585_v26  ;;  %v642_v39 = vmax.f32 %v594_v13, 0.0 }
 0x118   : > { %v656_v38 = vadd.f32 %v655_v36, %v624_v35  ;;  %v625_v40 = vmax.f32 %v525_v37, 0.0  ;;  %v589_v35 = vadd.f32 %v1411_v50, %v588_v33  ;;  %v597_v37 = vadd.f32 %v1440_v31, %v1411_v50 }
 0x119   : > { %v640_v34 = vmax.f32 %v586_v28, 0.0 }
 0x11a   : > { %v657_v42 = vadd.f32 %v656_v38, %v625_v40  ;;  %v969_v43 = vpop.f32.mrb[12].mxu0  ;;  %v985_v44 = vpop.f32.mrb[12].mxu1  ;;  %v641_v38 = vmax.f32 %v589_v35, 0.0  ;;  %v643_v40 = vmax.f32 %v597_v37, 0.0 }
 0x11b   : > { %v537_v45 = vpop.f32.mrb[13].mxu0  ;;  %v601_v46 = vpop.f32.mrb[13].mxu1  ;;  %v546_v58 = vadd.f32 %v969_v43, %v1411_v50  ;;  %v610_v33 = vadd.f32 %v985_v44, %v1411_v50 }
 0x11c   : > { %v658_v48 = vadd.f32 %v657_v42, %v626_v41  ;;  %v538_v49 = vadd.f32 %v1411_v50, %v537_v45  ;;  %v970_v51 = vpop.f32.mrb[14].mxu0  ;;  %v986_v53 = vpop.f32.mrb[14].mxu1  ;;  %v602_v11 = vadd.f32 %v1411_v50, %v601_v46 }
 0x11d   : > { %v540_v55 = vpop.f32.mrb[15].mxu0  ;;  %v604_v56 = vpop.f32.mrb[15].mxu1  ;;  %v549_v0 = vadd.f32 %v970_v51, %v1411_v50  ;;  %v630_v3 = vmax.f32 %v546_v58, 0.0  ;;  %v613_v24 = vadd.f32 %v986_v53, %v1411_v50 }
 0x11e   : > { %v628_v60 = vmax.f32 %v538_v49, 0.0  ;;  %v659_v61 = vadd.f32 %v658_v48, %v627_v47  ;;  %v541_v62 = vadd.f32 %v1411_v50, %v540_v55  ;;  %v644_v42 = vmax.f32 %v602_v11, 0.0 }
 0x11f   : > { %v631_v7 = vmax.f32 %v549_v0, 0.0  ;;  %v605_v43 = vadd.f32 %v1411_v50, %v604_v56  ;;  %v646_v49 = vmax.f32 %v610_v33, 0.0  ;;  %v647_v51 = vmax.f32 %v613_v24, 0.0  ;;  %v648_v56 = vld [vmem:[#allocation2] sm:$0x1] }
 0x120   : > { %v660_v63 = vadd.f32 %v659_v61, %v628_v60  ;;  %v629_v1 = vmax.f32 %v541_v62, 0.0  ;;  %v708_v50 = vld [vmem:[%s1534_s4] sm:$0x1] }
 0x121   : > { %v645_v48 = vmax.f32 %v605_v43, 0.0 }
 0x122   : > { %v661_v5 = vadd.f32 %v660_v63, %v629_v1 }
 0x124   : > { %v662_v8 = vadd.f32 %v661_v5, %v630_v3 }
 0x126   : > { %v663_v14 = vadd.f32 %v662_v8, %v631_v7 }
 0x128   : > { %v664_v15 = vadd.f32 %v663_v14, %v632_v9 }
 0x12a   : > { %v665_v19 = vadd.f32 %v664_v15, %v633_v17 }
 0x12c   : > { %v666_v21 = vadd.f32 %v665_v19, %v634_v18 }
 0x12e   : > { %v667_v23 = vadd.f32 %v666_v21, %v635_v20 }
 0x130   : > { %v668_v25 = vadd.f32 %v667_v23, %v636_v22 }
 0x132   : > { %v669_v29 = vadd.f32 %v668_v25, %v637_v27 }
 0x134   : > { %v670_v32 = vadd.f32 %v669_v29, %v638_v6 }
 0x136   : > { %v671_v36 = vadd.f32 %v670_v32, %v639_v30 }
 0x138   : > { %v672_v4 = vadd.f32 %v671_v36, %v640_v34 }
 0x13a   : > { %v673_v26 = vadd.f32 %v672_v4, %v641_v38 }
 0x13c   : > { %v674_v41 = vadd.f32 %v673_v26, %v642_v39 }
 0x13e   : > { %v675_v45 = vadd.f32 %v674_v41, %v643_v40 }
 0x140   : > { %v676_v47 = vadd.f32 %v675_v45, %v644_v42 }
 0x142   : > { %v677_v31 = vadd.f32 %v676_v47, %v645_v48 }
 0x144   : > { %v678_v46 = vadd.f32 %v677_v31, %v646_v49 }
 0x146   : > { %v679_v55 = vadd.f32 %v678_v46, %v647_v51 }
 0x148   : > { %v680_v58 = vrot.slane %v679_v55, 4 }
 0x14a   : > { %v681_v60 = vadd.f32 %v680_v58, %v679_v55 }
 0x14c   : > { %v682_v61 = vrot.slane %v681_v60, 2 }
 0x14e   : > { %v683_v62 = vadd.f32 %v682_v61, %v681_v60 }
 0x150   : > { %v684_v63 = vrot.slane %v683_v62, 1 }
 0x152   : > { %v685_v0 = vadd.f32 %v684_v63, %v683_v62 }
 0x154   : > { %v686_v44 = vadd.f32 %v685_v0, %v648_v56 }
 0x156   : > { %687 = vst [vmem:[#allocation2] sm:$0x1] %v686_v44 }
 0x15d   : > { %v691_v1 = vld [vmem:[#allocation2] sm:$0x1] }
 0x15e   : > { %1020 = vmatmul.mubr.f32.vlgmr.msra.gmra.mrb[16].mxu1 %v691_v1 }
 0x231   : > { %v775_v53 = vpop.f32.mrb[16].mxu1 }
 0x232   : > { %v776_v2 = vadd.f32 %v775_v53, %v708_v50  ;;  %v1021_v3 = vpop.f32.mrb[17].mxu1 }
 0x234   : > { %779 = vst [vmem:[%s239_s29] sm:$0x1] %v776_v2 }
 0x235   : > { %1157 = shalt.err (!%p1154_p5)
}
 0x236   : > { %s1158_s15 = scalar_lea.hbm %s1483_s10, 16  ;;  %s1162_s25 = scalar_lea.hbm %s1535_s5, 32 }
 0x237   : > { %p1159_p6 = scmp.ne.s32.totalorder %s1483_s10, %s1158_s15  ;;  %p1163_p10 = scmp.lt.u32.totalorder %s1483_s10, %s1535_s5 }
 0x238   : > { %p1164_p11 = scmp.lt.u32.totalorder %s1162_s25, %s1158_s15  ;;  %p1166_p13 = scmp.lt.u32.totalorder %s1158_s15, %s1483_s10 }
 0x239   : > { %p1160_p7 = pnand %p1159_p6, %p1298_p4 }
 0x23a   : > { %p1165_p12 = por %p1164_p11, %p1163_p10 }
 0x23b   : > { %p1161_p9 = pneg %p1160_p7 }
 0x23c   : > { %p1167_p0 = por %p1166_p13, %p1165_p12 }
 0x23e   : > { %p1168_p1 = pnand %p1167_p0, %p1161_p9 }
 0x240   : > { %1171 = shalt.err (!%p1168_p1)
}
 0x241   : > { %1062 = dma.vmem_to_hbm [thread:$0]  (%p1298_p4), %s1485_s7, 16, %s1483_s10, %s781_s11  }
 0x242 PF: > { %p1068_p2 = scmp.ge.s32.totalorder %s1222_s23, 2  ;;  %s805_s29 = sand.u32 1, %s1202_s18  }
 0x243   : > { %s806_s8 = scalar_lea.sflag [#allocation4], %s805_s29 }
 0x244   : > { %p1065_p3 = pnand %p1068_p2, %p1305_p8 }
 0x246   : > { %1197 = dma.done.wait (!%p1065_p3), %s806_s8, 16  }
 0x247   : > { %1199 = vsyncadd (!%p1065_p3), %s806_s8, 4294967280  ;;  %s18_s23 = sadd.s32 1, %s1222_s23   ;;  %s1538_s18 = smov %s1206_s19 }
 0x248   : > { %p15_p5 = scmp.ge.s32.totalorder %s18_s23, 4   ;;  %s1539_s19 = smov %s1210_s20 }
 0x249   : > { %s1540_s20 = smov %s1311_s6  ;;  %s1541_s21 = smov %s1218_s22 }
 0x24a   : > { %s1542_s22 = smov %s1544_s26  ;;  %17 = sbr.rel (!%p15_p5) target bundleno = 4 (0x4), region = 83 }
 0x251   :  { %810 = vsyncpa [#allocation4], 1 }
 0x252   :  { %812 = vsyncpa [#allocation4 + $0x1], 1 }

</bundles_post_ra>
